<compile_context>
chip_gen: v7x
topology: tpu7x:2x2x1
jax: 0.10.0
libtpu: 0.0.40
codegen_flags: <defaults>
</compile_context>

<pallas_src>
from functools import partial

import numpy as np
import jax
import jax.numpy as jnp
from jax.experimental import pallas as pl
from jax.experimental.pallas import tpu as pltpu

BN_EPS = 1e-5


def _conv_bn_relu_kernel(xf_ref, u_ref, p_ref, scale_ref, bias_ref, o_ref):
    """Fused conv3x3(stride1) + BatchNorm(batch stats) + ReLU in the W-folded layout.

    xf_ref    : (B, H+2p, W*Cin)        H-halo-padded input, (W,Cin) folded on lanes
    u_ref     : (KH*W*Cin, Wout*Cout)   banded conv weight (W taps + W padding encoded)
    p_ref     : (NL, NL)                lane->channel group indicator / (B*Hout*Wout)
    scale_ref : (1, 1, NL)              BN gamma tiled per lane
    bias_ref  : (1, 1, NL)              BN beta tiled per lane
    o_ref     : (B, Hout, NL)           lane-dense output, NL = Wout*Cout
    """
    B, Hout, NL = o_ref.shape
    Hp = xf_ref.shape[1]
    K = xf_ref.shape[2]                 # W * Cin (contraction depth per kh tap)
    KH = Hp - Hout + 1
    mxu_dtype = u_ref.dtype

    # --- convolution: KH big-K matmuls against the banded weight ---
    acc = None
    for kh in range(KH):                # static unroll (KH == 3)
        slab = xf_ref[:, kh:kh + Hout, :].astype(mxu_dtype)          # (B, Hout, K)
        u_kh = u_ref[kh * K:(kh + 1) * K, :]                         # (K, NL), 8-aligned rows
        part = jax.lax.dot_general(
            slab, u_kh, dimension_numbers=(((2,), (0,)), ((), ())),
            preferred_element_type=jnp.float32)                      # (B, Hout, NL) f32
        acc = part if acc is None else acc + part

    # --- BatchNorm2d, training-mode batch stats, f32, two-pass variance ---
    pmat = p_ref[...]                                                # (NL, NL), includes 1/n
    s1 = jnp.sum(acc, axis=(0, 1), keepdims=True)                    # (1, 1, NL)
    mean = jax.lax.dot_general(                                      # per-channel mean, per lane
        s1, pmat, dimension_numbers=(((2,), (0,)), ((), ())),
        preferred_element_type=jnp.float32)
    d = acc - mean
    s2 = jnp.sum(d * d, axis=(0, 1), keepdims=True)
    var = jax.lax.dot_general(                                       # biased variance, per lane
        s2, pmat, dimension_numbers=(((2,), (0,)), ((), ())),
        preferred_element_type=jnp.float32)
    inv_std = jax.lax.rsqrt(var + BN_EPS)                            # EUP, free slot

    # --- scale/shift + ReLU, full-lane-width unmasked store ---
    y = d * (inv_std * scale_ref[...]) + bias_ref[...]
    o_ref[...] = jnp.maximum(y, 0.0).astype(o_ref.dtype)


@partial(jax.jit, static_argnames=("padding", "compute_dtype"))
def basic_conv_nhwc(x_nhwc, w_oihw, gamma, beta, *, padding=1, compute_dtype=None):
    """BasicConv forward on NHWC input. Returns (B, Hout, Wout, Cout) NHWC."""
    B, H, W, Cin = x_nhwc.shape
    Cout, Cin_w, KH, KW = w_oihw.shape
    assert Cin_w == Cin
    Hout = H + 2 * padding - KH + 1          # stride == 1 only
    Wout = W + 2 * padding - KW + 1
    NL = Wout * Cout                         # output lane width (128 for the covered config)
    WCin = W * Cin                           # contraction depth per kh tap
    Hp = H + 2 * padding
    mxu_dtype = jnp.dtype(compute_dtype) if compute_dtype is not None else jnp.float32

    # ---- input prep: fold (W, Cin) onto lanes; pad only the 1-row H halo (W halo lives in the
    #      banded weight).  Reshape is free on row-major HBM; the pad fuses with the adapter's
    #      layout transpose under jit.
    xf = jnp.pad(x_nhwc.astype(jnp.float32),
                 ((0, 0), (padding, padding), (0, 0), (0, 0)))
    xf = xf.reshape(B, Hp, WCin)

    # ---- banded weight:
    #      U[kh*WCin + wp*Cin + ci, w*Cout + co] = W[kh, kw, ci, co] with kw = wp - w + padding,
    #      zero outside the band / image (this also implements the W zero-padding).
    w_hwio = jnp.transpose(w_oihw, (2, 3, 1, 0)).astype(jnp.float32)   # (KH, KW, Cin, Cout)
    sel = np.zeros((KW, W, Wout), np.float32)
    for kw in range(KW):
        for w in range(Wout):
            wp = w + kw - padding
            if 0 <= wp < W:
                sel[kw, wp, w] = 1.0
    u = jnp.einsum("kpw,hkio->hpiwo", jnp.asarray(sel), w_hwio)        # (KH, W, Cin, Wout, Cout)
    u = u.reshape(KH * WCin, NL).astype(mxu_dtype)

    # ---- per-lane BN params + lane->channel group-average matrix (1/n folded in).
    n = B * Hout * Wout
    lane_chan = np.arange(NL) % Cout
    pmat = (lane_chan[:, None] == lane_chan[None, :]).astype(np.float32) / float(n)
    scale = jnp.tile(gamma.astype(jnp.float32), Wout).reshape(1, 1, NL)
    bias = jnp.tile(beta.astype(jnp.float32), Wout).reshape(1, 1, NL)

    out = pl.pallas_call(
        _conv_bn_relu_kernel,
        out_shape=jax.ShapeDtypeStruct((B, Hout, NL), x_nhwc.dtype),
        grid=(1,),  # whole (small) problem in VMEM; BN needs global batch stats in one step
        in_specs=[
            pl.BlockSpec((B, Hp, WCin), lambda i: (0, 0, 0)),
            pl.BlockSpec((KH * WCin, NL), lambda i: (0, 0)),
            pl.BlockSpec((NL, NL), lambda i: (0, 0)),
            pl.BlockSpec((1, 1, NL), lambda i: (0, 0, 0)),
            pl.BlockSpec((1, 1, NL), lambda i: (0, 0, 0)),
        ],
        out_specs=pl.BlockSpec((B, Hout, NL), lambda i: (0, 0, 0)),
        compiler_params=pltpu.CompilerParams(dimension_semantics=("arbitrary",)),
    )(xf, u, jnp.asarray(pmat), scale, bias)

    return out.reshape(B, Hout, Wout, Cout)


@partial(jax.jit, static_argnames=("padding", "compute_dtype"))
def basic_conv_forward(x_nchw, w_oihw, gamma, beta, *, padding=1, compute_dtype=None):
    """NCHW adapter matching the PyTorch BasicConv interface (x: (B,Cin,H,W), w: (Cout,Cin,KH,KW))."""
    x_nhwc = jnp.transpose(x_nchw, (0, 2, 3, 1))
    y = basic_conv_nhwc(x_nhwc, w_oihw, gamma, beta,
                        padding=padding, compute_dtype=compute_dtype)
    return jnp.transpose(y, (0, 3, 1, 2))


def _reference(x_nchw, w_oihw, gamma, beta, *, padding=1):
    y = jax.lax.conv_general_dilated(
        x_nchw, w_oihw, window_strides=(1, 1),
        padding=((padding, padding), (padding, padding)),
        dimension_numbers=("NCHW", "OIHW", "NCHW"))
    mean = jnp.mean(y, axis=(0, 2, 3), keepdims=True)
    var = jnp.var(y, axis=(0, 2, 3), keepdims=True)  # biased, matches BN training forward
    y = (y - mean) * jax.lax.rsqrt(var + BN_EPS)
    y = y * gamma.reshape(1, -1, 1, 1) + beta.reshape(1, -1, 1, 1)
    return jnp.maximum(y, 0.0)


if __name__ == "__main__":
    # BasicConv(in_channels=4, out_channels=8, kernel_size=3, stride=1, padding=1)
    B, Cin, H, W = 2, 4, 16, 16
    Cout, KH, KW = 8, 3, 3

    key = jax.random.PRNGKey(0)
    kx, kw = jax.random.split(key)
    x = jax.random.normal(kx, (B, Cin, H, W), dtype=jnp.float32)
    weight = 0.1 * jax.random.normal(kw, (Cout, Cin, KH, KW), dtype=jnp.float32)
    gamma = 1.0 + 0.05 * jnp.arange(Cout, dtype=jnp.float32)
    beta = 0.02 * jnp.arange(Cout, dtype=jnp.float32)

    ref = jax.block_until_ready(_reference(x, weight, gamma, beta, padding=1))

    # f32 path (default; v5e keeps everything f32).
    out = jax.block_until_ready(basic_conv_forward(x, weight, gamma, beta, padding=1))
    assert out.shape == (B, Cout, H, W), out.shape
    assert jnp.allclose(out, ref, rtol=5e-4, atol=5e-4), float(jnp.max(jnp.abs(out - ref)))

    # bf16 MXU-operand path (v6e/v7x); accumulation and BN stay f32.
    out_bf16 = jax.block_until_ready(
        basic_conv_forward(x, weight, gamma, beta, padding=1, compute_dtype=jnp.bfloat16))
    assert jnp.allclose(out_bf16, ref, rtol=5e-2, atol=5e-2), float(jnp.max(jnp.abs(out_bf16 - ref)))

    print("KERNEL_OK")
</pallas_src>

<mosaic_0001>
module attributes {stable_mosaic.version = 11 : i64} {
  func.func @_conv_bn_relu_kernel(%arg0: i32, %arg1: memref<2x18x64xf32, #tpu.memory_space<vmem>>, %arg2: memref<192x128xf32, #tpu.memory_space<vmem>>, %arg3: memref<128x128xf32, #tpu.memory_space<vmem>>, %arg4: memref<1x1x128xf32, #tpu.memory_space<vmem>>, %arg5: memref<1x1x128xf32, #tpu.memory_space<vmem>>, %arg6: memref<2x16x128xf32, #tpu.memory_space<vmem>>) attributes {dimension_semantics = [#tpu.dimension_semantics<arbitrary>], iteration_bounds = array<i64: 1>, scalar_prefetch = 0 : i64, scratch_operands = 0 : i64, tpu.core_type = #tpu.core_type<tc>, window_params = [{pipeline_mode = #tpu.pipeline_mode<synchronous>, transform_indices = @transform_0, window_bounds = array<i64: 2, 18, 64>}, {pipeline_mode = #tpu.pipeline_mode<synchronous>, transform_indices = @transform_1, window_bounds = array<i64: 192, 128>}, {pipeline_mode = #tpu.pipeline_mode<synchronous>, transform_indices = @transform_2, window_bounds = array<i64: 128, 128>}, {pipeline_mode = #tpu.pipeline_mode<synchronous>, transform_indices = @transform_3, window_bounds = array<i64: 1, 1, 128>}, {pipeline_mode = #tpu.pipeline_mode<synchronous>, transform_indices = @transform_4, window_bounds = array<i64: 1, 1, 128>}, {pipeline_mode = #tpu.pipeline_mode<synchronous>, transform_indices = @transform_5, window_bounds = array<i64: 2, 16, 128>}]} {
    %c0 = arith.constant 0 : index
    %c0_0 = arith.constant 0 : index
    %c0_1 = arith.constant 0 : index
    %0 = vector.load %arg1[%c0, %c0_0, %c0_1] : memref<2x18x64xf32, #tpu.memory_space<vmem>>, vector<2x16x64xf32>
    %c0_2 = arith.constant 0 : index
    %c0_3 = arith.constant 0 : index
    %1 = vector.load %arg2[%c0_2, %c0_3] : memref<192x128xf32, #tpu.memory_space<vmem>>, vector<64x128xf32>
    %cst = arith.constant dense<0.000000e+00> : vector<2x16x128xf32>
    %2 = tpu.matmul %0, %1, %cst {dimension_numbers = #tpu.dot_dimension_numbers<[2], [0], [0, 1], [1], [0, 0, 0, 1, 1, 1], [], []>} : vector<2x16x64xf32>, vector<64x128xf32>, vector<2x16x128xf32> -> vector<2x16x128xf32>
    %c0_4 = arith.constant 0 : index
    %c1 = arith.constant 1 : index
    %c0_5 = arith.constant 0 : index
    %3 = vector.load %arg1[%c0_4, %c1, %c0_5] : memref<2x18x64xf32, #tpu.memory_space<vmem>>, vector<2x16x64xf32>
    %c64 = arith.constant 64 : index
    %c0_6 = arith.constant 0 : index
    %4 = vector.load %arg2[%c64, %c0_6] : memref<192x128xf32, #tpu.memory_space<vmem>>, vector<64x128xf32>
    %cst_7 = arith.constant dense<0.000000e+00> : vector<2x16x128xf32>
    %5 = tpu.matmul %3, %4, %cst_7 {dimension_numbers = #tpu.dot_dimension_numbers<[2], [0], [0, 1], [1], [0, 0, 0, 1, 1, 1], [], []>} : vector<2x16x64xf32>, vector<64x128xf32>, vector<2x16x128xf32> -> vector<2x16x128xf32>
    %6 = arith.addf %2, %5 : vector<2x16x128xf32>
    %c0_8 = arith.constant 0 : index
    %c2 = arith.constant 2 : index
    %c0_9 = arith.constant 0 : index
    %7 = vector.load %arg1[%c0_8, %c2, %c0_9] : memref<2x18x64xf32, #tpu.memory_space<vmem>>, vector<2x16x64xf32>
    %c128 = arith.constant 128 : index
    %c0_10 = arith.constant 0 : index
    %8 = vector.load %arg2[%c128, %c0_10] : memref<192x128xf32, #tpu.memory_space<vmem>>, vector<64x128xf32>
    %cst_11 = arith.constant dense<0.000000e+00> : vector<2x16x128xf32>
    %9 = tpu.matmul %7, %8, %cst_11 {dimension_numbers = #tpu.dot_dimension_numbers<[2], [0], [0, 1], [1], [0, 0, 0, 1, 1, 1], [], []>} : vector<2x16x64xf32>, vector<64x128xf32>, vector<2x16x128xf32> -> vector<2x16x128xf32>
    %10 = arith.addf %6, %9 : vector<2x16x128xf32>
    %c0_12 = arith.constant 0 : index
    %c0_13 = arith.constant 0 : index
    %11 = vector.load %arg3[%c0_12, %c0_13] : memref<128x128xf32, #tpu.memory_space<vmem>>, vector<128x128xf32>
    %cst_14 = arith.constant dense<0.000000e+00> : vector<128xf32>
    %12 = vector.multi_reduction <add>, %10, %cst_14 [0, 1] : vector<2x16x128xf32> to vector<128xf32>
    %13 = vector.shape_cast %12 : vector<128xf32> to vector<1x1x128xf32>
    %cst_15 = arith.constant dense<0.000000e+00> : vector<1x1x128xf32>
    %14 = tpu.matmul %13, %11, %cst_15 {dimension_numbers = #tpu.dot_dimension_numbers<[2], [0], [0, 1], [1], [0, 0, 0, 1, 1, 1], [], []>} : vector<1x1x128xf32>, vector<128x128xf32>, vector<1x1x128xf32> -> vector<1x1x128xf32>
    %15 = vector.broadcast %14 : vector<1x1x128xf32> to vector<2x16x128xf32>
    %16 = arith.subf %10, %15 : vector<2x16x128xf32>
    %17 = arith.mulf %16, %16 : vector<2x16x128xf32>
    %cst_16 = arith.constant dense<0.000000e+00> : vector<128xf32>
    %18 = vector.multi_reduction <add>, %17, %cst_16 [0, 1] : vector<2x16x128xf32> to vector<128xf32>
    %19 = vector.shape_cast %18 : vector<128xf32> to vector<1x1x128xf32>
    %cst_17 = arith.constant dense<0.000000e+00> : vector<1x1x128xf32>
    %20 = tpu.matmul %19, %11, %cst_17 {dimension_numbers = #tpu.dot_dimension_numbers<[2], [0], [0, 1], [1], [0, 0, 0, 1, 1, 1], [], []>} : vector<1x1x128xf32>, vector<128x128xf32>, vector<1x1x128xf32> -> vector<1x1x128xf32>
    %cst_18 = arith.constant 9.99999974E-6 : f32
    %21 = vector.broadcast %cst_18 : f32 to vector<1x1x128xf32>
    %22 = arith.addf %20, %21 : vector<1x1x128xf32>
    %23 = math.rsqrt %22 : vector<1x1x128xf32>
    %c0_19 = arith.constant 0 : index
    %c0_20 = arith.constant 0 : index
    %c0_21 = arith.constant 0 : index
    %24 = vector.load %arg4[%c0_19, %c0_20, %c0_21] : memref<1x1x128xf32, #tpu.memory_space<vmem>>, vector<1x1x128xf32>
    %25 = arith.mulf %23, %24 : vector<1x1x128xf32>
    %26 = vector.broadcast %25 : vector<1x1x128xf32> to vector<2x16x128xf32>
    %27 = arith.mulf %16, %26 : vector<2x16x128xf32>
    %c0_22 = arith.constant 0 : index
    %c0_23 = arith.constant 0 : index
    %c0_24 = arith.constant 0 : index
    %28 = vector.load %arg5[%c0_22, %c0_23, %c0_24] : memref<1x1x128xf32, #tpu.memory_space<vmem>>, vector<1x1x128xf32>
    %29 = vector.broadcast %28 : vector<1x1x128xf32> to vector<2x16x128xf32>
    %30 = arith.addf %27, %29 : vector<2x16x128xf32>
    %cst_25 = arith.constant 0.000000e+00 : f32
    %31 = vector.broadcast %cst_25 : f32 to vector<2x16x128xf32>
    %32 = arith.maximumf %30, %31 : vector<2x16x128xf32>
    %c0_26 = arith.constant 0 : index
    %c0_27 = arith.constant 0 : index
    %c0_28 = arith.constant 0 : index
    %33 = vector.load %arg6[%c0_26, %c0_27, %c0_28] : memref<2x16x128xf32, #tpu.memory_space<vmem>>, vector<2x16x128xf32>
    tpu.vector_store %arg6[%c0_26, %c0_27, %c0_28], %32 {strides = array<i32>} : memref<2x16x128xf32, #tpu.memory_space<vmem>>, vector<2x16x128xf32>,
    return
  }
  func.func @transform_0(%arg0: i32) -> (i32, i32, i32) {
    %c0_i32 = arith.constant 0 : i32
    %c0_i32_0 = arith.constant 0 : i32
    %c0_i32_1 = arith.constant 0 : i32
    %c0_i32_2 = arith.constant 0 : i32
    return %c0_i32, %c0_i32_0, %c0_i32_1 : i32, i32, i32
  }
  func.func @transform_1(%arg0: i32) -> (i32, i32) {
    %c0_i32 = arith.constant 0 : i32
    %c0_i32_0 = arith.constant 0 : i32
    %c0_i32_1 = arith.constant 0 : i32
    return %c0_i32, %c0_i32_0 : i32, i32
  }
  func.func @transform_2(%arg0: i32) -> (i32, i32) {
    %c0_i32 = arith.constant 0 : i32
    %c0_i32_0 = arith.constant 0 : i32
    %c0_i32_1 = arith.constant 0 : i32
    return %c0_i32, %c0_i32_0 : i32, i32
  }
  func.func @transform_3(%arg0: i32) -> (i32, i32, i32) {
    %c0_i32 = arith.constant 0 : i32
    %c0_i32_0 = arith.constant 0 : i32
    %c0_i32_1 = arith.constant 0 : i32
    %c0_i32_2 = arith.constant 0 : i32
    return %c0_i32, %c0_i32_0, %c0_i32_1 : i32, i32, i32
  }
  func.func @transform_4(%arg0: i32) -> (i32, i32, i32) {
    %c0_i32 = arith.constant 0 : i32
    %c0_i32_0 = arith.constant 0 : i32
    %c0_i32_1 = arith.constant 0 : i32
    %c0_i32_2 = arith.constant 0 : i32
    return %c0_i32, %c0_i32_0, %c0_i32_1 : i32, i32, i32
  }
  func.func @transform_5(%arg0: i32) -> (i32, i32, i32) {
    %c0_i32 = arith.constant 0 : i32
    %c0_i32_0 = arith.constant 0 : i32
    %c0_i32_1 = arith.constant 0 : i32
    %c0_i32_2 = arith.constant 0 : i32
    return %c0_i32, %c0_i32_0, %c0_i32_1 : i32, i32, i32
  }
}

</mosaic_0001>

<bundles_post_ra>
// kernel: tile.13
= control target key start
LH: loop header
LB: loop body
LE: loop exit
PB: predicated region body
PF: predicated region fallthrough
CT: control target
= control target key end

     0   :  { %s28_s0 = inlined_call_operand.vmem [shape: f32[8], index: 0, kind: input, shape index: {}]   ;;  %s29_s1 = inlined_call_operand.vmem [shape: f32[16,8], index: 1, kind: output, shape index: {}]  }
   0x1   :  { %v4_v0 = vld [vmem:[%s28_s0] ss:$0 sm:$0xff] }
   0x2   :  { %5 = vst [vmem:[%s29_s1] sm:$0xff] %v4_v0  ;;  %8 = vst [vmem:[%s29_s1 + $0x8] sm:$0xff] %v4_v0 }

// kernel: tile.14
= control target key start
LH: loop header
LB: loop body
LE: loop exit
PB: predicated region body
PF: predicated region fallthrough
CT: control target
= control target key end

     0   :  { %s131_s10 = smov 120   ;;  %s132_s11 = smov 104   ;;  %vm3_vm0 = vcmask 64512   ;;  %vm9_vm1 = vcmask 1048512   ;;  %vm15_vm2 = vcmask 982912   ;;  %vm21_vm3 = vcmask 917312   ;;  %s207_s0 = inlined_call_operand.vmem [shape: f32[16,8], index: 0, kind: input, shape index: {}]   ;;  %s208_s1 = inlined_call_operand.vmem [shape: f32[1,1,128], index: 1, kind: output, shape index: {}]  }
   0x1   :  { %v101_v0 = vld [vmem:[%s207_s0 + $0xf] sm:$0x1]   ;;  %v103_v1 = vld [vmem:[%s207_s0 + $0xd] sm:$0x1]   ;;  %v102_v2 = vld [vmem:[%s207_s0 + $0xe] sm:$0x1]  }
   0x2   :  { %7 = vrot.lane.b32.xlu0 %v101_v0, %s131_s10  ;;  %19 = vrot.lane.b32.xlu1 %v103_v1, %s132_s11  ;;  %v104_v3 = vld [vmem:[%s207_s0 + $0xc] sm:$0x1]   ;;  %s133_s16 = smov 112   ;;  %s134_s17 = smov 96   ;;  %v105_v4 = vld [vmem:[%s207_s0 + $0xb] sm:$0x1]  }
   0x3   :  { %v106_v5 = vld [vmem:[%s207_s0 + $0xa] sm:$0x1]   ;;  %v2_v6 = vld [vmem:[%s207_s0] sm:$0x1]   ;;  %s135_s24 = smov 88   ;;  %s136_s25 = smov 80  }
   0x4   :  { %4 = vst.msk [vmem:[#allocation0] sm:$0x1] %vm3_vm0, %v2_v6   ;;  %v107_v7 = vld [vmem:[%s207_s0 + $0x9] sm:$0x1]   ;;  %v108_v8 = vld [vmem:[%s207_s0 + $0x8] sm:$0x1]  }
   0x5   :  { %s137_s30 = smov 72   ;;  %s138_s2 = smov 64   ;;  %v109_v9 = vld [vmem:[%s207_s0 + $0x7] sm:$0x1]   ;;  %v110_v10 = vld [vmem:[%s207_s0 + $0x6] sm:$0x1]  }
   0x6   :  { %13 = vrot.lane.b32.xlu0 %v102_v2, %s133_s16  ;;  %25 = vrot.lane.b32.xlu1 %v104_v3, %s134_s17  ;;  %s139_s7 = smov 56   ;;  %s140_s8 = smov 48   ;;  %v111_v11 = vld [vmem:[%s207_s0 + $0x5] sm:$0x1]   ;;  %v112_v12 = vld [vmem:[%s207_s0 + $0x4] sm:$0x1]  }
   0x7   :  { %s141_s13 = smov 40   ;;  %s142_s14 = smov 32   ;;  %v113_v13 = vld [vmem:[%s207_s0 + $0x3] sm:$0x1]   ;;  %v114_v14 = vld [vmem:[%s207_s0 + $0x2] sm:$0x1]  }
   0x8   :  { %s143_s19 = smov 24   ;;  %s144_s20 = smov 16   ;;  %v115_v15 = vld [vmem:[%s207_s0 + $0x1] sm:$0x1]   ;;  %vm27_vm4 = vcmask 851712   ;;  %vm33_vm5 = vcmask 786112  }
   0x9   :  { %s145_s0 = smov 8   ;;  %vm39_vm6 = vcmask 720512   ;;  %vm45_vm7 = vcmask 654912   ;;  %vm51_vm8 = vcmask 589312   ;;  %vm57_vm9 = vcmask 523712  }
   0xa   :  { %31 = vrot.lane.b32.xlu0 %v105_v4, %s135_s24  ;;  %37 = vrot.lane.b32.xlu1 %v106_v5, %s136_s25  ;;  %vm63_vm10 = vcmask 458112   ;;  %vm69_vm11 = vcmask 392512   ;;  %vm75_vm12 = vcmask 326912   ;;  %vm81_vm13 = vcmask 261312  }
   0xb   :  { %vm87_vm14 = vcmask 195712   ;;  %vm93_vm15 = vcmask 130112  }
   0xe   :  { %43 = vrot.lane.b32.xlu0 %v107_v7, %s137_s30  ;;  %49 = vrot.lane.b32.xlu1 %v108_v8, %s138_s2 }
  0x12   :  { %55 = vrot.lane.b32.xlu0 %v109_v9, %s139_s7  ;;  %61 = vrot.lane.b32.xlu1 %v110_v10, %s140_s8 }
  0x16   :  { %67 = vrot.lane.b32.xlu0 %v111_v11, %s141_s13  ;;  %73 = vrot.lane.b32.xlu1 %v112_v12, %s142_s14 }
  0x1a   :  { %79 = vrot.lane.b32.xlu0 %v113_v13, %s143_s19  ;;  %85 = vrot.lane.b32.xlu1 %v114_v14, %s144_s20 }
  0x1e   :  { %91 = vrot.lane.b32.xlu0 %v115_v15, %s145_s0 }
  0x74   :  { %v8_v16 = vpop.permute.xlu0 %7   ;;  %v20_v17 = vpop.permute.xlu1 %19  }
  0x75   :  { %10 = vst.msk [vmem:[#allocation0] sm:$0x1] %vm9_vm1, %v8_v16  }
  0x78   :  { %v14_v18 = vpop.permute.xlu0 %13   ;;  %v26_v19 = vpop.permute.xlu1 %25  }
  0x79   :  { %16 = vst.msk [vmem:[#allocation0] sm:$0x1] %vm15_vm2, %v14_v18  }
  0x7a   :  { %22 = vst.msk [vmem:[#allocation0] sm:$0x1] %vm21_vm3, %v20_v17  }
  0x7b   :  { %28 = vst.msk [vmem:[#allocation0] sm:$0x1] %vm27_vm4, %v26_v19  }
  0x7c   :  { %v32_v20 = vpop.permute.xlu0 %31   ;;  %v38_v21 = vpop.permute.xlu1 %37  }
  0x7d   :  { %34 = vst.msk [vmem:[#allocation0] sm:$0x1] %vm33_vm5, %v32_v20  }
  0x7e   :  { %40 = vst.msk [vmem:[#allocation0] sm:$0x1] %vm39_vm6, %v38_v21  }
  0x80   :  { %v44_v22 = vpop.permute.xlu0 %43   ;;  %v50_v23 = vpop.permute.xlu1 %49  }
  0x81   :  { %46 = vst.msk [vmem:[#allocation0] sm:$0x1] %vm45_vm7, %v44_v22  }
  0x82   :  { %52 = vst.msk [vmem:[#allocation0] sm:$0x1] %vm51_vm8, %v50_v23  }
  0x84   :  { %v56_v24 = vpop.permute.xlu0 %55   ;;  %v62_v25 = vpop.permute.xlu1 %61  }
  0x85   :  { %58 = vst.msk [vmem:[#allocation0] sm:$0x1] %vm57_vm9, %v56_v24  }
  0x86   :  { %64 = vst.msk [vmem:[#allocation0] sm:$0x1] %vm63_vm10, %v62_v25  }
  0x88   :  { %v68_v26 = vpop.permute.xlu0 %67   ;;  %v74_v27 = vpop.permute.xlu1 %73  }
  0x89   :  { %70 = vst.msk [vmem:[#allocation0] sm:$0x1] %vm69_vm11, %v68_v26  }
  0x8a   :  { %76 = vst.msk [vmem:[#allocation0] sm:$0x1] %vm75_vm12, %v74_v27  }
  0x8c   :  { %v80_v28 = vpop.permute.xlu0 %79   ;;  %v86_v29 = vpop.permute.xlu1 %85  }
  0x8d   :  { %82 = vst.msk [vmem:[#allocation0] sm:$0x1] %vm81_vm13, %v80_v28  }
  0x8e   :  { %88 = vst.msk [vmem:[#allocation0] sm:$0x1] %vm87_vm14, %v86_v29  }
  0x90   :  { %v92_v30 = vpop.permute.xlu0 %91  }
  0x91   :  { %94 = vst.msk [vmem:[#allocation0] sm:$0x1] %vm93_vm15, %v92_v30  }
  0x98   :  { %v98_v31 = vld [vmem:[#allocation0] sm:$0x1] }
  0x99   :  { %100 = vst [vmem:[%s208_s1] sm:$0x1] %v98_v31 }

// kernel: basic_conv_nhwc.1
= control target key start
LH: loop header
LB: loop body
LE: loop exit
PB: predicated region body
PF: predicated region fallthrough
CT: control target
= control target key end

     0   :  { %vm44_vm0 = vcmask 523264   ;;  %v900_v3 = vmov 0.0|0.0   ;;  %vm901_vm1 = vmmov 0   ;;  %s1149_s1 = inlined_call_operand.vmem [shape: f32[192,128], index: 1, kind: input, shape index: {}]   ;;  %s1150_s0 = inlined_call_operand.vmem [shape: f32[2,18,64], index: 0, kind: input, shape index: {}]   ;;  %s1151_s2 = inlined_call_operand.vmem [shape: f32[128,128], index: 2, kind: input, shape index: {}]   ;;  %s1152_s3 = inlined_call_operand.vmem [shape: f32[1,1,128], index: 3, kind: input, shape index: {}]   ;;  %s1153_s4 = inlined_call_operand.vmem [shape: f32[1,1,128], index: 4, kind: input, shape index: {}]   ;;  %s1154_s5 = inlined_call_operand.vmem [shape: f32[2,16,128], index: 5, kind: output, shape index: {}]  }
   0x1   :  { %v36_v0 = vld [vmem:[%s1149_s1 + $0x40] sm:$0xff]  ;;  %v37_v1 = vld [vmem:[%s1149_s1 + $0x48] sm:$0xff]  ;;  %v38_v2 = vld [vmem:[%s1149_s1 + $0x50] sm:$0xff]  ;;  %839 = vmatprep.subr.bf16.mxu1 %v900_v3 }
   0x2   :  { %v791_v4 = vpack.c.bf16 %v37_v1, %v36_v0  ;;  %v39_v5 = vld [vmem:[%s1149_s1 + $0x58] sm:$0xff]  ;;  %v40_v7 = vld [vmem:[%s1149_s1 + $0x60] sm:$0xff]  ;;  %v41_v8 = vld [vmem:[%s1149_s1 + $0x68] sm:$0xff] }
   0x3   :  { %v795_v6 = vpack.c.bf16 %v39_v5, %v38_v2  ;;  %v32_v9 = vld [vmem:[%s1150_s0 + $0x1] sm:$0xff]  ;;  %v799_v10 = vpack.c.bf16 %v41_v8, %v40_v7  ;;  %v42_v11 = vld [vmem:[%s1149_s1 + $0x70] sm:$0xff]  ;;  %v43_v12 = vld [vmem:[%s1149_s1 + $0x78] sm:$0xff] }
   0x4   :  { %792 = vmatprep.subr.bf16.mxu0 %v791_v4  ;;  %671 = vmatprep.mubr.msk.f32.mxu0 %vm44_vm0, %v32_v9  ;;  %v803_v13 = vpack.c.bf16 %v43_v12, %v42_v11  ;;  %v24_v14 = vld [vmem:[%s1149_s1] sm:$0xff]  ;;  %v25_v15 = vld [vmem:[%s1149_s1 + $0x8] sm:$0xff]  ;;  %v354_v18 = vld [vmem:[%s1151_s2 + $0x10] sm:$0xff] }
   0x5   :  { %794 = vmatpush3.bf16.msra.mxu0 %v791_v4  ;;  %v352_v16 = vld [vmem:[%s1151_s2] sm:$0xff]  ;;  %v353_v17 = vld [vmem:[%s1151_s2 + $0x8] sm:$0xff]  ;;  %v807_v19 = vpack.c.bf16 %v25_v15, %v24_v14  ;;  %v355_v21 = vld [vmem:[%s1151_s2 + $0x18] sm:$0xff] }
   0x6   :  { %796 = vmatprep.subr.bf16.mxu0 %v795_v6  ;;  %v977_v20 = vpack.c.bf16 %v353_v17, %v352_v16  ;;  %v26_v22 = vld [vmem:[%s1149_s1 + $0x10] sm:$0xff]  ;;  %v27_v23 = vld [vmem:[%s1149_s1 + $0x18] sm:$0xff]  ;;  %v989_v24 = vpack.c.bf16 %v355_v21, %v354_v18  ;;  %v356_v26 = vld [vmem:[%s1151_s2 + $0x20] sm:$0xff] }
   0x7   :  { %v33_v25 = vld [vmem:[%s1150_s0 + $0x9] sm:$0xff]  ;;  %v811_v28 = vpack.c.bf16 %v27_v23, %v26_v22  ;;  %v34_v29 = vld [vmem:[%s1150_s0 + $0x19] sm:$0xff]  ;;  %v35_v33 = vld [vmem:[%s1150_s0 + $0x21] sm:$0xff] }
   0x8   :  { %841 = vmatpush3.bf16.msra.mxu1 %v977_v20  ;;  %v357_v27 = vld [vmem:[%s1151_s2 + $0x28] sm:$0xff]  ;;  %v28_v30 = vld [vmem:[%s1149_s1 + $0x20] sm:$0xff]  ;;  %v30_v36 = vld [vmem:[%s1149_s1 + $0x30] sm:$0xff] }
   0x9   :  { %798 = vmatpush3.bf16.msra.mxu0 %v795_v6  ;;  %842 = vmatprep.subr.bf16.mxu1 %v900_v3  ;;  %v29_v31 = vld [vmem:[%s1149_s1 + $0x28] sm:$0xff]  ;;  %v1012_v32 = vpack.c.bf16 %v357_v27, %v356_v26  ;;  %v20_v35 = vld [vmem:[%s1150_s0] sm:$0xff]  ;;  %v31_v37 = vld [vmem:[%s1149_s1 + $0x38] sm:$0xff] }
   0xa   :  { %800 = vmatprep.subr.bf16.mxu0 %v799_v10  ;;  %v815_v34 = vpack.c.bf16 %v29_v31, %v28_v30  ;;  %v819_v38 = vpack.c.bf16 %v31_v37, %v30_v36  ;;  %v243_v39 = vld [vmem:[%s1149_s1 + $0x80] sm:$0xff]  ;;  %v244_v40 = vld [vmem:[%s1149_s1 + $0x88] sm:$0xff]  ;;  %v245_v42 = vld [vmem:[%s1149_s1 + $0x90] sm:$0xff] }
   0xb   :  { %v823_v41 = vpack.c.bf16 %v244_v40, %v243_v39  ;;  %v246_v43 = vld [vmem:[%s1149_s1 + $0x98] sm:$0xff]  ;;  %v21_v44 = vld [vmem:[%s1150_s0 + $0x8] sm:$0xff]  ;;  %v247_v47 = vld [vmem:[%s1149_s1 + $0xa0] sm:$0xff] }
   0xc   :  { %844 = vmatpush3.bf16.msra.mxu1 %v989_v24  ;;  %v827_v45 = vpack.c.bf16 %v246_v43, %v245_v42  ;;  %v22_v46 = vld [vmem:[%s1150_s0 + $0x18] sm:$0xff]  ;;  %v248_v48 = vld [vmem:[%s1149_s1 + $0xa8] sm:$0xff]  ;;  %v23_v49 = vld [vmem:[%s1150_s0 + $0x20] sm:$0xff] }
   0xd   :  { %802 = vmatpush3.bf16.msra.mxu0 %v799_v10  ;;  %845 = vmatprep.subr.bf16.mxu1 %v900_v3  ;;  %v831_v50 = vpack.c.bf16 %v248_v48, %v247_v47  ;;  %v239_v51 = vld [vmem:[%s1150_s0 + $0x2] sm:$0xff]  ;;  %v249_v52 = vld [vmem:[%s1149_s1 + $0xb0] sm:$0xff]  ;;  %v250_v53 = vld [vmem:[%s1149_s1 + $0xb8] sm:$0xff]  ;;  %v902_v10 = vmov 0.0  }
   0xe   :  { %804 = vmatprep.subr.bf16.mxu0 %v803_v13  ;;  %v835_v54 = vpack.c.bf16 %v250_v53, %v249_v52  ;;  %v240_v55 = vld [vmem:[%s1150_s0 + $0xa] sm:$0xff]  ;;  %v241_v56 = vld [vmem:[%s1150_s0 + $0x1a] sm:$0xff]  ;;  %v242_v57 = vld [vmem:[%s1150_s0 + $0x22] sm:$0xff]  ;;  %753 = vmatprep.mubr.msk.f32.mxu1 %vm901_vm1, %v902_v10 }
   0xf   :  { %v358_v58 = vld [vmem:[%s1151_s2 + $0x30] sm:$0xff]  ;;  %v359_v59 = vld [vmem:[%s1151_s2 + $0x38] sm:$0xff]  ;;  %v360_v61 = vld [vmem:[%s1151_s2 + $0x40] sm:$0xff] }
  0x10   :  { %847 = vmatpush3.bf16.msra.mxu1 %v1012_v32  ;;  %v849_v60 = vpack.c.bf16 %v359_v59, %v358_v58  ;;  %v361_v62 = vld [vmem:[%s1151_s2 + $0x48] sm:$0xff]  ;;  %v362_v0 = vld [vmem:[%s1151_s2 + $0x50] sm:$0xff]  ;;  %v363_v1 = vld [vmem:[%s1151_s2 + $0x58] sm:$0xff] }
  0x11   :  { %806 = vmatpush3.bf16.msra.mxu0 %v803_v13  ;;  %848 = vmatprep.subr.bf16.mxu1 %v900_v3  ;;  %v852_v63 = vpack.c.bf16 %v361_v62, %v360_v61  ;;  %v855_v2 = vpack.c.bf16 %v363_v1, %v362_v0  ;;  %v364_v4 = vld [vmem:[%s1151_s2 + $0x60] sm:$0xff]  ;;  %v365_v5 = vld [vmem:[%s1151_s2 + $0x68] sm:$0xff]  ;;  %v366_v7 = vld [vmem:[%s1151_s2 + $0x70] sm:$0xff] }
  0x12   :  { %808 = vmatprep.subr.bf16.mxu0 %v807_v19  ;;  %v858_v6 = vpack.c.bf16 %v365_v5, %v364_v4  ;;  %v367_v8 = vld [vmem:[%s1151_s2 + $0x78] sm:$0xff]  ;;  %v584_v53 = vld [vmem:[%s1153_s4] ss:$0 sm:$0xff] }
  0x13   :  { %v861_v9 = vpack.c.bf16 %v367_v8, %v366_v7 }
  0x14   :  { %672 = vmatmul.mubr.msk.f32.vlgmr.msra.gmra.mrb[0].mxu0 %vm44_vm0, %v33_v25  ;;  %850 = vmatpush3.bf16.msra.mxu1 %v849_v60 }
  0x15   :  { %810 = vmatpush3.bf16.msra.mxu0 %v807_v19  ;;  %674 = vmatprep.mubr.msk.f32.mxu0 %vm44_vm0, %v34_v29 }
  0x16   :  { %812 = vmatprep.subr.bf16.mxu0 %v811_v28  ;;  %851 = vmatprep.subr.bf16.mxu1 %v900_v3 }
  0x18   :  { %675 = vmatmul.mubr.msk.f32.gmra.mrb[2].mxu0 %vm44_vm0, %v35_v33  ;;  %853 = vmatpush3.bf16.msra.mxu1 %v852_v63 }
  0x19   :  { %814 = vmatpush3.bf16.msra.mxu0 %v811_v28  ;;  %693 = vmatprep.mubr.msk.f32.mxu0 %vm44_vm0, %v20_v35 }
  0x1a   :  { %816 = vmatprep.subr.bf16.mxu0 %v815_v34  ;;  %854 = vmatprep.subr.bf16.mxu1 %v900_v3 }
  0x1c   :  { %856 = vmatpush3.bf16.msra.mxu1 %v855_v2 }
  0x1d   :  { %818 = vmatpush3.bf16.msra.mxu0 %v815_v34  ;;  %857 = vmatprep.subr.bf16.mxu1 %v900_v3 }
  0x1e   :  { %820 = vmatprep.subr.bf16.mxu0 %v819_v38 }
  0x20   :  { %859 = vmatpush3.bf16.msra.mxu1 %v858_v6 }
  0x21   :  { %822 = vmatpush3.bf16.msra.mxu0 %v819_v38  ;;  %860 = vmatprep.subr.bf16.mxu1 %v900_v3 }
  0x22   :  { %824 = vmatprep.subr.bf16.mxu0 %v823_v41 }
  0x24   :  { %694 = vmatmul.mubr.msk.f32.vlgmr.msra.gmra.mrb[0].mxu0 %vm44_vm0, %v21_v44  ;;  %862 = vmatpush3.bf16.msra.mxu1 %v861_v9 }
  0x25   :  { %826 = vmatpush3.bf16.msra.mxu0 %v823_v41  ;;  %696 = vmatprep.mubr.msk.f32.mxu0 %vm44_vm0, %v22_v46 }
  0x26   :  { %828 = vmatprep.subr.bf16.mxu0 %v827_v45  ;;  %863 = vmatprep.subr.bf16.mxu1 %v900_v3 }
  0x28   :  { %697 = vmatmul.mubr.msk.f32.gmra.mrb[2].mxu0 %vm44_vm0, %v23_v49  ;;  %v539_v49 = vld [vmem:[%s1152_s3] sm:$0x1] }
  0x29   :  { %830 = vmatpush3.bf16.msra.mxu0 %v827_v45  ;;  %715 = vmatprep.mubr.msk.f32.mxu0 %vm44_vm0, %v239_v51 }
  0x2a   :  { %832 = vmatprep.subr.bf16.mxu0 %v831_v50 }
  0x2d   :  { %834 = vmatpush3.bf16.msra.mxu0 %v831_v50 }
  0x2e   :  { %836 = vmatprep.subr.bf16.mxu0 %v835_v54 }
  0x31   :  { %838 = vmatpush3.bf16.msra.mxu0 %v835_v54 }
  0x34   :  { %716 = vmatmul.mubr.msk.f32.vlgmr.msra.gmra.mrb[0].mxu0 %vm44_vm0, %v240_v55 }
  0x35   :  { %718 = vmatprep.mubr.msk.f32.mxu0 %vm44_vm0, %v241_v56 }
  0x38   :  { %719 = vmatmul.mubr.msk.f32.gmra.mrb[2].mxu0 %vm44_vm0, %v242_v57 }
 0x107   :  { %v717_v11 = vpop.f32.mrb[0].mxu0 }
 0x108   :  { %v329_v12 = vpop.f32.mrb[1].mxu0 }
 0x109   :  { %v368_v13 = vadd.f32 %v717_v11, %v329_v12 }
 0x10b   :  { %v720_v14 = vpop.f32.mrb[2].mxu0 }
 0x10c   :  { %v339_v15 = vpop.f32.mrb[3].mxu0 }
 0x10d   :  { %v369_v16 = vadd.f32 %v368_v13, %v339_v15 }
 0x10f   :  { %v370_v17 = vadd.f32 %v720_v14, %v369_v16 }
 0x111   :  { %v371_v18 = vrot.slane %v370_v17, 4 }
 0x113   :  { %v372_v19 = vadd.f32 %v371_v18, %v370_v17 }
 0x115   :  { %v373_v21 = vrot.slane %v372_v19, 2 }
 0x117   :  { %v374_v22 = vadd.f32 %v373_v21, %v372_v19 }
 0x119   :  { %v375_v23 = vrot.slane %v374_v22, 1 }
 0x11b   :  { %v376_v25 = vadd.f32 %v375_v23, %v374_v22 }
 0x11d   :  { %754 = vmatmul.mubr.f32.vlgmr.msra.gmra.mrb[0].mxu1 %v376_v25 }
 0x11e   :  { %865 = vmatpush3.bf16.msra.mxu1 %v977_v20  ;;  %788 = vmatprep.mubr.msk.f32.mxu1 %vm901_vm1, %v902_v10  ;;  %v447_v20 = vlaneseq }
 0x11f   :  { %866 = vmatprep.subr.bf16.mxu1 %v900_v3 }
 0x122   :  { %868 = vmatpush3.bf16.msra.mxu1 %v989_v24  ;;  %v448_v24 = vshrl.u32 %v447_v20, 7 }
 0x123   :  { %869 = vmatprep.subr.bf16.mxu1 %v900_v3 }
 0x124   :  { %v449_v26 = vsub.s32 0, %v448_v24 }
 0x126   :  { %871 = vmatpush3.bf16.msra.mxu1 %v1012_v32 }
 0x127   :  { %872 = vmatprep.subr.bf16.mxu1 %v900_v3 }
 0x12a   :  { %874 = vmatpush3.bf16.msra.mxu1 %v849_v60 }
 0x12b   :  { %875 = vmatprep.subr.bf16.mxu1 %v900_v3 }
 0x12e   :  { %877 = vmatpush3.bf16.msra.mxu1 %v852_v63 }
 0x12f   :  { %878 = vmatprep.subr.bf16.mxu1 %v900_v3 }
 0x132   :  { %880 = vmatpush3.bf16.msra.mxu1 %v855_v2 }
 0x133   :  { %881 = vmatprep.subr.bf16.mxu1 %v900_v3 }
 0x136   :  { %883 = vmatpush3.bf16.msra.mxu1 %v858_v6 }
 0x137   :  { %884 = vmatprep.subr.bf16.mxu1 %v900_v3 }
 0x13a   :  { %886 = vmatpush3.bf16.msra.mxu1 %v861_v9 }
 0x1f0   :  { %v443_v27 = vpop.f32.mrb[0].mxu1 }
 0x1f1   :  { %v450_v28 = vrot.slane %v443_v27, %v449_v26  ;;  %v755_v29 = vpop.f32.mrb[1].mxu1 }
 0x1f3   :  { %v451_v30 = vsub.f32 %v329_v12, %v450_v28  ;;  %v452_v31 = vsub.f32 %v717_v11, %v450_v28  ;;  %v453_v32 = vsub.f32 %v339_v15, %v450_v28  ;;  %v454_v33 = vsub.f32 %v720_v14, %v450_v28 }
 0x1f5   :  { %v455_v34 = vmul.f32 %v451_v30, %v451_v30  ;;  %v456_v35 = vmul.f32 %v452_v31, %v452_v31  ;;  %v457_v36 = vmul.f32 %v453_v32, %v453_v32  ;;  %v458_v38 = vmul.f32 %v454_v33, %v454_v33 }
 0x1f7   :  { %v459_v37 = vadd.f32 %v456_v35, %v455_v34 }
 0x1f9   :  { %v460_v39 = vadd.f32 %v459_v37, %v457_v36 }
 0x1fb   :  { %v461_v40 = vadd.f32 %v460_v39, %v458_v38 }
 0x1fd   :  { %v462_v41 = vrot.slane %v461_v40, 4 }
 0x1ff   :  { %v463_v3 = vadd.f32 %v462_v41, %v461_v40 }
 0x201   :  { %v464_v42 = vrot.slane %v463_v3, 2 }
 0x203   :  { %v465_v43 = vadd.f32 %v464_v42, %v463_v3 }
 0x205   :  { %v466_v44 = vrot.slane %v465_v43, 1 }
 0x207   :  { %v467_v45 = vadd.f32 %v466_v44, %v465_v43 }
 0x209   :  { %789 = vmatmul.mubr.f32.vlgmr.msra.gmra.mrb[2].mxu1 %v467_v45 }
 0x2dc   :  { %v534_v46 = vpop.f32.mrb[2].mxu1 }
 0x2dd   :  { %v535_v47 = vadd.f32 1e-05, %v534_v46  ;;  %v790_v48 = vpop.f32.mrb[3].mxu1 }
 0x2df   :  { %898 = vrsqrt.f32 %v535_v47 }
 0x2e9   :  { %v899_v50 = vpop.eup %898 }
 0x2ea   :  { %v540_v51 = vmul.f32 %v899_v50, %v539_v49 }
 0x2ec   :  { %v544_v52 = vrot.slane %v540_v51, %v449_v26 }
 0x2ee   :  { %v545_v54 = vmul.f32 %v544_v52, %v451_v30  ;;  %v546_v55 = vmul.f32 %v544_v52, %v452_v31  ;;  %v547_v56 = vmul.f32 %v544_v52, %v453_v32  ;;  %v548_v57 = vmul.f32 %v544_v52, %v454_v33 }
 0x2f0   :  { %v556_v58 = vadd.f32 %v584_v53, %v545_v54  ;;  %v557_v59 = vadd.f32 %v584_v53, %v546_v55  ;;  %v558_v60 = vadd.f32 %v584_v53, %v547_v56  ;;  %v559_v61 = vadd.f32 %v584_v53, %v548_v57 }
 0x2f2   :  { %v560_v62 = vmax.f32 %v556_v58, 0.0  ;;  %v561_v63 = vmax.f32 %v557_v59, 0.0  ;;  %v562_v0 = vmax.f32 %v558_v60, 0.0  ;;  %v563_v1 = vmax.f32 %v559_v61, 0.0 }
 0x2f4   :  { %564 = vst [vmem:[%s1154_s5] sm:$0xff] %v560_v62  ;;  %565 = vst [vmem:[%s1154_s5 + $0x8] sm:$0xff] %v561_v63 }
 0x2f5   :  { %566 = vst [vmem:[%s1154_s5 + $0x10] sm:$0xff] %v562_v0  ;;  %567 = vst [vmem:[%s1154_s5 + $0x18] sm:$0xff] %v563_v1 }

</bundles_post_ra>
